<compile_context>
chip_gen: v6e
topology: v6e:2x2x1
jax: 0.10.0
libtpu: 0.0.40
codegen_flags: <defaults>
</compile_context>

<pallas_src>
import math
import functools

import jax
import jax.numpy as jnp
from jax.experimental import pallas as pl
from jax.experimental.pallas import tpu as pltpu

# ---- model hyper-params (small, deterministic) ----
B = 2            # batch
C = 4            # image channels
IMG = 16         # spatial H = W
PATCH = 8        # patch size -> P = (16/8)^2 = 4 patches (sequence length)
P = (IMG // PATCH) ** 2
PATCH_DIM = C * PATCH * PATCH    # 256
D = 32           # embed dim
NH = 2           # attention heads
DH = D // NH     # head dim = 16


def _attn_kernel(x_ref, wqk_ref, o_ref, *, n_batch, n_heads, seq, head_dim):
    """Single-invocation attention-probability kernel.

    x_ref  : (B*P, PATCH_DIM)  VMEM   flattened patches, batch folded into rows
    wqk_ref: (PATCH_DIM, 2*D)  VMEM   fused+scaled [W_e@W_q/sqrt(dh) | W_e@W_k]
    o_ref  : (B*NH, P, P)      VMEM   attention probabilities
    """
    d = n_heads * head_dim
    # One fused MXU matmul for the whole batch: (8, 256) @ (256, 64).
    qk = jnp.dot(x_ref[...], wqk_ref[...], preferred_element_type=jnp.float32)

    # Assemble per-(batch, head) Q / K tiles: (B*NH, P, DH).  Only static
    # slices + a leading-axis stack (no in-kernel lane-dim reshape/transpose).
    q_tiles, k_tiles = [], []
    for b in range(n_batch):
        r0 = b * seq
        for h in range(n_heads):
            c0 = h * head_dim
            q_tiles.append(qk[r0:r0 + seq, c0:c0 + head_dim])
            k_tiles.append(qk[r0:r0 + seq, d + c0:d + c0 + head_dim])
    q3 = jnp.stack(q_tiles, axis=0)          # (B*NH, P, DH)
    k3 = jnp.stack(k_tiles, axis=0)          # (B*NH, P, DH)

    # One batched score contraction on the last dim (no explicit kh.T); the
    # 1/sqrt(DH) scale is already folded into the Q columns of the weight.
    s = jnp.einsum("nqd,nkd->nqk", q3, k3,
                   preferred_element_type=jnp.float32)      # (B*NH, P, P)

    # Single softmax over all heads / batches, single consolidated store.
    m = jnp.max(s, axis=-1, keepdims=True)
    e = jnp.exp(s - m)
    denom = jnp.sum(e, axis=-1, keepdims=True)
    o_ref[...] = (e * pl.reciprocal(denom, approx=False)).astype(o_ref.dtype)


def _extract_patches(image):
    """[B, C, H, W] -> [B*P, C*PATCH*PATCH] non-overlapping patches (XLA glue)."""
    b, c, h, w = image.shape
    gh, gw = h // PATCH, w // PATCH
    x = image.reshape(b, c, gh, PATCH, gw, PATCH)
    x = jnp.transpose(x, (0, 2, 4, 1, 3, 5))
    return x.reshape(b * gh * gw, c * PATCH * PATCH)


def _fuse_weights(w_embed, w_q, w_k):
    """Fold patch embedding + softmax scale into one (PATCH_DIM, 2*D) weight."""
    scale = 1.0 / math.sqrt(DH)
    return jnp.concatenate([w_embed @ (w_q * scale), w_embed @ w_k], axis=1)


def vinai_transform(image, w_embed, w_q, w_k):
    """image: [B, C, H, W] float32 -> attentions [B, NH, P, P] float32."""
    b = image.shape[0]
    patches = _extract_patches(image)                 # (B*P, PATCH_DIM)
    w_fused = _fuse_weights(w_embed, w_q, w_k)        # (PATCH_DIM, 2*D)

    kernel = functools.partial(_attn_kernel, n_batch=b, n_heads=NH,
                               seq=P, head_dim=DH)

    out = pl.pallas_call(
        kernel,
        out_shape=jax.ShapeDtypeStruct((b * NH, P, P), jnp.float32),
        in_specs=[
            pl.BlockSpec(memory_space=pltpu.MemorySpace.VMEM),
            pl.BlockSpec(memory_space=pltpu.MemorySpace.VMEM),
        ],
        out_specs=pl.BlockSpec(memory_space=pltpu.MemorySpace.VMEM),
    )(patches, w_fused)
    return out.reshape(b, NH, P, P)


# ---------------- references (pure XLA) ----------------
def _reference_fused(image, w_embed, w_q, w_k):
    """Same fused formulation as the kernel, evaluated with plain XLA ops."""
    b = image.shape[0]
    patches = _extract_patches(image)
    qk = patches @ _fuse_weights(w_embed, w_q, w_k)
    q_t = [qk[bi * P:(bi + 1) * P, h * DH:(h + 1) * DH]
           for bi in range(b) for h in range(NH)]
    k_t = [qk[bi * P:(bi + 1) * P, D + h * DH:D + (h + 1) * DH]
           for bi in range(b) for h in range(NH)]
    s = jnp.einsum("nqd,nkd->nqk", jnp.stack(q_t), jnp.stack(k_t))
    return jax.nn.softmax(s, axis=-1).reshape(b, NH, P, P)


def _reference_unfused(image, w_embed, w_q, w_k):
    """Textbook softmax((X We Wq)(X We Wk)^T / sqrt(dh)) with unfused weights."""
    b = image.shape[0]
    patches = _extract_patches(image).reshape(b, P, PATCH_DIM)
    tok = patches @ w_embed
    q = (tok @ w_q).reshape(b, P, NH, DH).transpose(0, 2, 1, 3)
    k = (tok @ w_k).reshape(b, P, NH, DH).transpose(0, 2, 1, 3)
    s = jnp.einsum("bhqd,bhkd->bhqk", q, k) / math.sqrt(DH)
    return jax.nn.softmax(s, axis=-1)


if __name__ == "__main__":
    key = jax.random.PRNGKey(0)
    k_img, k_we, k_wq, k_wk = jax.random.split(key, 4)

    image = jax.random.normal(k_img, (B, C, IMG, IMG), dtype=jnp.float32)
    # Deterministic synthetic parameters (module __init__ defines none).
    w_embed = jax.random.normal(k_we, (PATCH_DIM, D), dtype=jnp.float32) * 0.05
    w_q = jax.random.normal(k_wq, (D, D), dtype=jnp.float32) * 0.1
    w_k = jax.random.normal(k_wk, (D, D), dtype=jnp.float32) * 0.1

    attn = vinai_transform(image, w_embed, w_q, w_k)
    attn = jax.block_until_ready(attn)
    assert attn.shape == (B, NH, P, P)

    # Tight check: identical fused-weight math run through plain XLA.
    ref_fused = _reference_fused(image, w_embed, w_q, w_k)
    assert jnp.allclose(attn, ref_fused, atol=1e-4, rtol=1e-4), \
        "mismatch vs fused reference"

    # Loose check vs the unfused textbook formulation: only difference is the
    # f32 weight-folding reassociation (MXU default-precision dependent).
    ref_unfused = _reference_unfused(image, w_embed, w_q, w_k)
    assert jnp.allclose(attn, ref_unfused, atol=5e-2, rtol=0.0), \
        "mismatch vs unfused reference"

    # Probabilities must sum to 1 along the key axis.
    assert jnp.allclose(jnp.sum(attn, axis=-1), 1.0, atol=1e-5)

    print("KERNEL_OK")
</pallas_src>

<mosaic_0001>
module attributes {stable_mosaic.version = 11 : i64} {
  func.func @_attn_kernel(%arg0: memref<8x256xf32, #tpu.memory_space<vmem>>, %arg1: memref<256x64xf32, #tpu.memory_space<vmem>>, %arg2: memref<4x4x4xf32, #tpu.memory_space<vmem>>) attributes {dimension_semantics = [], scalar_prefetch = 0 : i64, scratch_operands = 0 : i64, tpu.core_type = #tpu.core_type<tc>} {
    %c0 = arith.constant 0 : index
    %c0_0 = arith.constant 0 : index
    %0 = vector.load %arg0[%c0, %c0_0] : memref<8x256xf32, #tpu.memory_space<vmem>>, vector<8x256xf32>
    %c0_1 = arith.constant 0 : index
    %c0_2 = arith.constant 0 : index
    %1 = vector.load %arg1[%c0_1, %c0_2] : memref<256x64xf32, #tpu.memory_space<vmem>>, vector<256x64xf32>
    %cst = arith.constant dense<0.000000e+00> : vector<8x64xf32>
    %2 = tpu.matmul %0, %1, %cst {dimension_numbers = #tpu.dot_dimension_numbers<[1], [0], [0], [1], [0, 0, 1, 1], [], []>} : vector<8x256xf32>, vector<256x64xf32>, vector<8x64xf32> -> vector<8x64xf32>
    %3 = vector.extract_strided_slice %2 {offsets = [0, 0], sizes = [4, 16], strides = [1, 1]} : vector<8x64xf32> to vector<4x16xf32>
    %4 = vector.extract_strided_slice %2 {offsets = [0, 32], sizes = [4, 16], strides = [1, 1]} : vector<8x64xf32> to vector<4x16xf32>
    %5 = vector.extract_strided_slice %2 {offsets = [0, 16], sizes = [4, 16], strides = [1, 1]} : vector<8x64xf32> to vector<4x16xf32>
    %6 = vector.extract_strided_slice %2 {offsets = [0, 48], sizes = [4, 16], strides = [1, 1]} : vector<8x64xf32> to vector<4x16xf32>
    %7 = vector.extract_strided_slice %2 {offsets = [4, 0], sizes = [4, 16], strides = [1, 1]} : vector<8x64xf32> to vector<4x16xf32>
    %8 = vector.extract_strided_slice %2 {offsets = [4, 32], sizes = [4, 16], strides = [1, 1]} : vector<8x64xf32> to vector<4x16xf32>
    %9 = vector.extract_strided_slice %2 {offsets = [4, 16], sizes = [4, 16], strides = [1, 1]} : vector<8x64xf32> to vector<4x16xf32>
    %10 = vector.extract_strided_slice %2 {offsets = [4, 48], sizes = [4, 16], strides = [1, 1]} : vector<8x64xf32> to vector<4x16xf32>
    %11 = vector.shape_cast %3 : vector<4x16xf32> to vector<1x4x16xf32>
    %12 = vector.shape_cast %5 : vector<4x16xf32> to vector<1x4x16xf32>
    %13 = vector.shape_cast %7 : vector<4x16xf32> to vector<1x4x16xf32>
    %14 = vector.shape_cast %9 : vector<4x16xf32> to vector<1x4x16xf32>
    %15 = tpu.concatenate %11, %12, %13, %14 in 0 : vector<1x4x16xf32>, vector<1x4x16xf32>, vector<1x4x16xf32>, vector<1x4x16xf32> -> vector<4x4x16xf32>
    %16 = vector.shape_cast %4 : vector<4x16xf32> to vector<1x4x16xf32>
    %17 = vector.shape_cast %6 : vector<4x16xf32> to vector<1x4x16xf32>
    %18 = vector.shape_cast %8 : vector<4x16xf32> to vector<1x4x16xf32>
    %19 = vector.shape_cast %10 : vector<4x16xf32> to vector<1x4x16xf32>
    %20 = tpu.concatenate %16, %17, %18, %19 in 0 : vector<1x4x16xf32>, vector<1x4x16xf32>, vector<1x4x16xf32>, vector<1x4x16xf32> -> vector<4x4x16xf32>
    "tpu.trace_start"() <{level = 10 : i32, message = "nqd,nkd->nqk"}> : () -> ()
    %cst_3 = arith.constant dense<0.000000e+00> : vector<4x4x4xf32>
    %21 = tpu.matmul %15, %20, %cst_3 {dimension_numbers = #tpu.dot_dimension_numbers<[2], [2], [1], [1], [0, 0, 0, 1, 1, 1], [0], [0]>} : vector<4x4x16xf32>, vector<4x4x16xf32>, vector<4x4x4xf32> -> vector<4x4x4xf32>
    "tpu.trace_stop"() : () -> ()
    %cst_4 = arith.constant dense<0xFF800000> : vector<4x4xf32>
    %22 = vector.multi_reduction <maximumf>, %21, %cst_4 [2] : vector<4x4x4xf32> to vector<4x4xf32>
    %23 = vector.shape_cast %22 : vector<4x4xf32> to vector<4x4x1xf32>
    %24 = vector.broadcast %23 : vector<4x4x1xf32> to vector<4x4x4xf32>
    %25 = arith.subf %21, %24 : vector<4x4x4xf32>
    %26 = math.exp %25 : vector<4x4x4xf32>
    %cst_5 = arith.constant dense<0.000000e+00> : vector<4x4xf32>
    %27 = vector.multi_reduction <add>, %26, %cst_5 [2] : vector<4x4x4xf32> to vector<4x4xf32>
    %28 = vector.shape_cast %27 : vector<4x4xf32> to vector<4x4x1xf32>
    %29 = tpu.reciprocal %28 : vector<4x4x1xf32> -> vector<4x4x1xf32>
    %30 = vector.broadcast %29 : vector<4x4x1xf32> to vector<4x4x4xf32>
    %31 = arith.mulf %26, %30 : vector<4x4x4xf32>
    %c0_6 = arith.constant 0 : index
    %c0_7 = arith.constant 0 : index
    %c0_8 = arith.constant 0 : index
    %32 = vector.load %arg2[%c0_6, %c0_7, %c0_8] : memref<4x4x4xf32, #tpu.memory_space<vmem>>, vector<4x4x4xf32>
    tpu.vector_store %arg2[%c0_6, %c0_7, %c0_8], %31 {strides = array<i32>} : memref<4x4x4xf32, #tpu.memory_space<vmem>>, vector<4x4x4xf32>,
    return
  }
}

</mosaic_0001>

<bundles_post_ra>
// kernel: tpu_custom_call.1
= control target key start
LH: loop header
LB: loop body
LE: loop exit
PB: predicated region body
PF: predicated region fallthrough
CT: control target
= control target key end

     0   :  { %s759_s0 = inlined_call_operand.vmem [shape: f32[8,256], index: 0, kind: input, shape index: {}]   ;;  %s760_s1 = inlined_call_operand.vmem [shape: f32[256,64], index: 1, kind: input, shape index: {}]   ;;  %s761_s2 = inlined_call_operand.hbm [shape: f32[4,4,4], index: 2, kind: output, shape index: {}]  }
   0x1   :  { %v45_v0 = vld [vmem:[%s760_s1 + $0xf8] sm:$0xff]  ;;  %v44_v2 = vld [vmem:[%s760_s1 + $0xf0] sm:$0xff]  ;;  %v43_v4 = vld [vmem:[%s760_s1 + $0xe8] sm:$0xff] }
   0x2   :  { %v29_v1 = vld [vmem:[%s760_s1 + $0x78] sm:$0xff]  ;;  %500 = vmatprep.subr.mxu0 %v45_v0  ;;  %v28_v3 = vld [vmem:[%s760_s1 + $0x70] sm:$0xff]  ;;  %v27_v5 = vld [vmem:[%s760_s1 + $0x68] sm:$0xff] }
   0x3   :  { %501 = vmatpush3.msra.mxu0 %v29_v1  ;;  %v42_v6 = vld [vmem:[%s760_s1 + $0xe0] sm:$0xff]  ;;  %v41_v8 = vld [vmem:[%s760_s1 + $0xd8] sm:$0xff]  ;;  %v40_v10 = vld [vmem:[%s760_s1 + $0xd0] sm:$0xff] }
   0x4   :  { %502 = vmatprep.subr.mxu0 %v44_v2  ;;  %v26_v7 = vld [vmem:[%s760_s1 + $0x60] sm:$0xff]  ;;  %v25_v9 = vld [vmem:[%s760_s1 + $0x58] sm:$0xff]  ;;  %v24_v11 = vld [vmem:[%s760_s1 + $0x50] sm:$0xff] }
   0x5   :  { %503 = vmatpush3.msra.mxu0 %v28_v3  ;;  %v39_v12 = vld [vmem:[%s760_s1 + $0xc8] sm:$0xff] }
   0x6   :  { %504 = vmatprep.subr.mxu0 %v43_v4  ;;  %v13_v13 = vld [vmem:[%s759_s0 + $0x8] sm:$0xff] }
   0x7   :  { %505 = vmatpush3.msra.mxu0 %v27_v5  ;;  %v23_v14 = vld [vmem:[%s760_s1 + $0x48] sm:$0xff]  ;;  %110 = vmatprep.mubr.f32.mxu0 %v13_v13 }
   0x8   :  { %506 = vmatprep.subr.mxu0 %v42_v6 }
   0x9   :  { %507 = vmatpush3.msra.mxu0 %v26_v7 }
   0xa   :  { %508 = vmatprep.subr.mxu0 %v41_v8 }
   0xb   :  { %509 = vmatpush3.msra.mxu0 %v25_v9 }
   0xc   :  { %510 = vmatprep.subr.mxu0 %v40_v10 }
   0xd   :  { %7 = vsyncpa [#allocation3], 0  ;;  %511 = vmatpush3.msra.mxu0 %v24_v11  ;;  %v38_v15 = vld [vmem:[%s760_s1 + $0xc0] sm:$0xff]  ;;  %v37_v17 = vld [vmem:[%s760_s1 + $0xb8] sm:$0xff]  ;;  %v608_v34 = vmov 0.0   ;;  %vm609_vm0 = vmmov 0  }
   0xe   :  { %512 = vmatprep.subr.mxu0 %v39_v12  ;;  %v22_v16 = vld [vmem:[%s760_s1 + $0x40] sm:$0xff]  ;;  %v21_v18 = vld [vmem:[%s760_s1 + $0x38] sm:$0xff]  ;;  %v36_v19 = vld [vmem:[%s760_s1 + $0xb0] sm:$0xff]  ;;  %543 = vmatprep.subr.mxu1 %v608_v34  ;;  %s610_s21 = smov 96   ;;  %s611_s22 = smov 112   ;;  %vm124_vm1 = vcmask 130048  }
   0xf   :  { %513 = vmatpush3.msra.mxu0 %v23_v14  ;;  %v20_v20 = vld [vmem:[%s760_s1 + $0x30] sm:$0xff]  ;;  %v35_v21 = vld [vmem:[%s760_s1 + $0xa8] sm:$0xff]  ;;  %v34_v23 = vld [vmem:[%s760_s1 + $0xa0] sm:$0xff]  ;;  %545 = vmatprep.mubr.msk.f32.mxu1 %vm609_vm0, %v608_v34  ;;  %vm427_vm2 = vcmask 27648  }
  0x10   :  { %514 = vmatprep.subr.mxu0 %v38_v15  ;;  %v19_v22 = vld [vmem:[%s760_s1 + $0x28] sm:$0xff]  ;;  %v18_v24 = vld [vmem:[%s760_s1 + $0x20] sm:$0xff]  ;;  %v33_v25 = vld [vmem:[%s760_s1 + $0x98] sm:$0xff] }
  0x11   :  { %515 = vmatpush3.msra.mxu0 %v22_v16  ;;  %v17_v26 = vld [vmem:[%s760_s1 + $0x18] sm:$0xff]  ;;  %v32_v27 = vld [vmem:[%s760_s1 + $0x90] sm:$0xff]  ;;  %v31_v29 = vld [vmem:[%s760_s1 + $0x88] sm:$0xff] }
  0x12   :  { %516 = vmatprep.subr.mxu0 %v37_v17  ;;  %v16_v28 = vld [vmem:[%s760_s1 + $0x10] sm:$0xff]  ;;  %v15_v30 = vld [vmem:[%s760_s1 + $0x8] sm:$0xff]  ;;  %v30_v31 = vld [vmem:[%s760_s1 + $0x80] sm:$0xff] }
  0x13   :  { %517 = vmatpush3.msra.mxu0 %v21_v18  ;;  %v14_v32 = vld [vmem:[%s760_s1] sm:$0xff] }
  0x14   :  { %518 = vmatprep.subr.mxu0 %v36_v19  ;;  %v12_v33 = vld [vmem:[%s759_s0] sm:$0xff]  ;;  %s612_s0 = smov [#allocation2]  }
  0x15   :  { %519 = vmatpush3.msra.mxu0 %v20_v20  ;;  %s481_s1 = sshll.u32 %s612_s0, 4  ;;  %s482_s1 = int_to_ptr.vmem [resolvable:$true] %s481_s1 }
  0x16   :  { %520 = vmatprep.subr.mxu0 %v35_v21  ;;  %s586_s23 = scalar_lea.vmem %s482_s1, 256  ;;  %p591_p1 = scmp.lt.s32.totalorder %s482_s1, %s482_s1 }
  0x17   :  { %521 = vmatpush3.msra.mxu0 %v19_v22  ;;  %p587_p0 = scmp.ne.s32.totalorder %s482_s1, %s586_s23  ;;  %p592_p2 = scmp.lt.s32.totalorder %s586_s23, %s586_s23 }
  0x18   :  { %522 = vmatprep.subr.mxu0 %v34_v23 }
  0x19   :  { %523 = vmatpush3.msra.mxu0 %v18_v24  ;;  %p593_p3 = por %p592_p2, %p591_p1 }
  0x1a   :  { %524 = vmatprep.subr.mxu0 %v33_v25 }
  0x1b   :  { %525 = vmatpush3.msra.mxu0 %v17_v26  ;;  %p594_p4 = pnand %p593_p3, %p587_p0 }
  0x1c   :  { %526 = vmatprep.subr.mxu0 %v32_v27 }
  0x1d   :  { %527 = vmatpush3.msra.mxu0 %v16_v28 }
  0x1e   :  { %528 = vmatprep.subr.mxu0 %v31_v29 }
  0x1f   :  { %529 = vmatpush3.msra.mxu0 %v15_v30 }
  0x20   :  { %530 = vmatprep.subr.mxu0 %v30_v31 }
  0x21   :  { %531 = vmatpush3.msra.mxu0 %v14_v32 }
  0x22   :  { %111 = vmatmul.mubr.f32.vlgmr.msra.gmra.mxu0 %v12_v33 }
  0xe2   :  { %v532_v35 = vpop.f32.mrf.mxu0 }
  0xe4   :  { %v533_v36 = vpop.f32.mrf.mxu0 }
  0xe5   :  { %v534_v37 = vadd.f32 %v533_v36, %v532_v35 }
  0xe7   :  { %122 = vrot.lane.b32.xlu1 %v534_v37, %s610_s21  ;;  %117 = vrot.lane.b32.xlu0 %v534_v37, %s611_s22  ;;  %v119_v38 = vrot.slane %v534_v37, 4 }
  0xeb   :  { %120 = vrot.lane.b32.xlu0 %v119_v38, %s611_s22 }
  0xef   :  { %275 = vrot.lane.b32.xlu0 %v119_v38, %s610_s21 }
 0x159   :  { %v123_v39 = vpop.permute.xlu1 %122  ;;  %v118_v40 = vpop.permute.xlu0 %117 }
 0x15a   :  { %544 = vmatpush3.xpose.msk.msra.mxu1 %vm124_vm1, %v123_v39  ;;  %199 = vrot.lane.b32.xlu1 %v118_v40, %s610_s21 }
 0x15b   :  { %548 = vmatprep.subr.mxu1 %v608_v34 }
 0x15d   :  { %546 = vmatmul.mubr.msk.f32.vlgmr.msra.gmra.mxu1 %vm124_vm1, %v534_v37  ;;  %v121_v41 = vpop.permute.xlu0 %120 }
 0x15e   :  { %351 = vrot.lane.b32.xlu1 %v121_v41, %s610_s21  ;;  %550 = vmatprep.mubr.msk.f32.mxu1 %vm609_vm0, %v608_v34 }
 0x161   :  { %v276_v43 = vpop.permute.xlu0 %275 }
 0x1cc   :  { %v200_v42 = vpop.permute.xlu1 %199 }
 0x1cd   :  { %549 = vmatpush3.xpose.msk.msra.mxu1 %vm124_vm1, %v200_v42 }
 0x1ce   :  { %553 = vmatprep.subr.mxu1 %v608_v34 }
 0x1d0   :  { %551 = vmatmul.mubr.msk.f32.vlgmr.msra.gmra.mxu1 %vm124_vm1, %v118_v40  ;;  %v352_v44 = vpop.permute.xlu1 %351 }
 0x1d1   :  { %554 = vmatpush3.xpose.msk.msra.mxu1 %vm124_vm1, %v276_v43  ;;  %555 = vmatprep.mubr.msk.f32.mxu1 %vm609_vm0, %v608_v34 }
 0x1d2   :  { %558 = vmatprep.subr.mxu1 %v608_v34 }
 0x1d4   :  { %556 = vmatmul.mubr.msk.f32.vlgmr.msra.gmra.mxu1 %vm124_vm1, %v119_v38 }
 0x1d5   :  { %559 = vmatpush3.xpose.msk.msra.mxu1 %vm124_vm1, %v352_v44  ;;  %560 = vmatprep.mubr.msk.f32.mxu1 %vm609_vm0, %v608_v34 }
 0x1d8   :  { %561 = vmatmul.mubr.msk.f32.vlgmr.msra.gmra.mxu1 %vm124_vm1, %v121_v41 }
 0x21d   :  { %v195_v45 = vpop.f32.mrf.mxu1 }
 0x21e   :  { %v428_v46 = vsel %vm427_vm2, %v195_v45, -inf }
 0x21f   :  { %v547_v47 = vpop.f32.mrf.mxu1  ;;  %429 = vmax.xlane.f32.xlu0 %v428_v46 }
 0x290   :  { %v271_v48 = vpop.f32.mrf.mxu1 }
 0x291   :  { %v431_v49 = vsel %vm427_vm2, %v271_v48, -inf }
 0x292   :  { %v552_v50 = vpop.f32.mrf.mxu1  ;;  %432 = vmax.xlane.f32.xlu1 %v431_v49 }
 0x294   :  { %v347_v51 = vpop.f32.mrf.mxu1 }
 0x295   :  { %v434_v52 = vsel %vm427_vm2, %v347_v51, -inf }
 0x296   :  { %435 = vmax.xlane.f32.xlu0 %v434_v52  ;;  %v557_v53 = vpop.f32.mrf.mxu1 }
 0x298   :  { %v423_v54 = vpop.f32.mrf.mxu1 }
 0x299   :  { %v437_v55 = vsel %vm427_vm2, %v423_v54, -inf }
 0x29a   :  { %438 = vmax.xlane.f32.xlu0 %v437_v55  ;;  %v562_v56 = vpop.f32.mrf.mxu1 }
 0x2a8   :  { %v430_v57 = vpop.xlane.xlu0 %429 }
 0x2a9   :  { %v440_v58 = vsub.f32 %v195_v45, %v430_v57 }
 0x2ab   :  { %v444_v59 = vmul.f32 1.442695, %v440_v58 }
 0x2ad   :  { %570 = vpow2.f32 %v444_v59 }
 0x2ba   :  { %v571_v60 = vpop.eup %570 }
 0x2bb   :  { %v452_v61 = vsel %vm427_vm2, %v571_v60, 0.0 }
 0x2bc   :  { %453 = vadd.xlane.f32.xlu1 %v452_v61 }
 0x31b   :  { %v433_v62 = vpop.xlane.xlu1 %432 }
 0x31c   :  { %v441_v63 = vsub.f32 %v271_v48, %v433_v62 }
 0x31e   :  { %v446_v0 = vmul.f32 1.442695, %v441_v63 }
 0x31f   :  { %v436_v1 = vpop.xlane.xlu0 %435 }
 0x320   :  { %572 = vpow2.f32 %v446_v0  ;;  %v442_v2 = vsub.f32 %v347_v51, %v436_v1 }
 0x322   :  { %v448_v3 = vmul.f32 1.442695, %v442_v2 }
 0x323   :  { %v439_v4 = vpop.xlane.xlu0 %438 }
 0x324   :  { %574 = vpow2.f32 %v448_v3  ;;  %v443_v5 = vsub.f32 %v423_v54, %v439_v4 }
 0x326   :  { %v450_v6 = vmul.f32 1.442695, %v443_v5 }
 0x328   :  { %576 = vpow2.f32 %v450_v6 }
 0x32d   :  { %v573_v7 = vpop.eup %572 }
 0x32e   :  { %v455_v8 = vsel %vm427_vm2, %v573_v7, 0.0 }
 0x32f   :  { %456 = vadd.xlane.f32.xlu0 %v455_v8 }
 0x331   :  { %v575_v9 = vpop.eup %574 }
 0x332   :  { %v458_v10 = vsel %vm427_vm2, %v575_v9, 0.0 }
 0x333   :  { %459 = vadd.xlane.f32.xlu1 %v458_v10 }
 0x335   :  { %v577_v11 = vpop.eup %576 }
 0x336   :  { %v461_v12 = vsel %vm427_vm2, %v577_v11, 0.0 }
 0x337   :  { %462 = vadd.xlane.f32.xlu0 %v461_v12 }
 0x345   :  { %v454_v13 = vpop.xlane.xlu1 %453 }
 0x346   :  { %578 = vrcp.f32 %v454_v13 }
 0x353   :  { %v579_v14 = vpop.eup %578 }
 0x354   :  { %v468_v15 = vmul.f32 %v579_v14, %v571_v60 }
 0x356   :  { %472 = vst.msk [vmem:[#allocation2] sm:$0xf] %vm427_vm2, %v468_v15 }
 0x3b8   :  { %v457_v16 = vpop.xlane.xlu0 %456 }
 0x3b9   :  { %580 = vrcp.f32 %v457_v16 }
 0x3bc   :  { %v460_v17 = vpop.xlane.xlu1 %459 }
 0x3bd   :  { %582 = vrcp.f32 %v460_v17 }
 0x3c0   :  { %v463_v18 = vpop.xlane.xlu0 %462 }
 0x3c1   :  { %584 = vrcp.f32 %v463_v18 }
 0x3c6   :  { %v581_v19 = vpop.eup %580 }
 0x3c7   :  { %v469_v20 = vmul.f32 %v581_v19, %v573_v7 }
 0x3c9   :  { %473 = vst.msk [vmem:[#allocation2 + $0x4] sm:$0xf] %vm427_vm2, %v469_v20 }
 0x3ca   :  { %v583_v21 = vpop.eup %582 }
 0x3cb   :  { %v470_v22 = vmul.f32 %v583_v21, %v575_v9 }
 0x3cd   :  { %474 = vst.msk [vmem:[#allocation2 + $0x8] sm:$0xf] %vm427_vm2, %v470_v22 }
 0x3ce   :  { %v585_v23 = vpop.eup %584 }
 0x3cf   :  { %v471_v24 = vmul.f32 %v585_v23, %v577_v11 }
 0x3d1   :  { %475 = vst.msk [vmem:[#allocation2 + $0xc] sm:$0xf] %vm427_vm2, %v471_v24 }
 0x3d2   :  { %597 = shalt.err (!%p594_p4)
}
 0x3d3   :  { %s613_s24 = smov 64   ;;  %s614_s25 = smov 4  }
 0x3d4   :  { %487 = dma.vmem_to_hbm [thread:$0]  %s482_s1, 256, %s761_s2, [#allocation3], %s613_s24, %s613_s24, %s614_s25  }
 0x3d5   :  { %606 = dma.done.wait [#allocation3], 256  }
 0x3d6   :  { %607 = vsyncadd [#allocation3], 4294967040 }
 0x3d7   :  { %491 = vsyncpa [#allocation3], 1 }

</bundles_post_ra>
